<compile_context>
chip_gen: v7x
topology: tpu7x:2x2x1
jax: 0.10.0
libtpu: 0.0.40
codegen_flags: <defaults>
</compile_context>

<pallas_src>
import jax
import jax.numpy as jnp
from jax.experimental import pallas as pl
from jax.experimental.pallas import tpu as pltpu


def _self_attention_kernel(xt_ref, h_ref, xq_ref, wqk_ref, gamma_ref, o_ref):
    # xt_ref : (1, N, C) bf16   key-side x, transposed (resident per batch)
    # h_ref  : (1, C, N) bf16   value projection Wv @ x (resident per batch)
    # xq_ref : (1, C, TM) f32   query/residual tile for this m step
    # wqk_ref: (C, C)    bf16   fused Wq^T Wk
    # gamma  : (1, 1)    f32    SMEM scalar
    x_tile = xq_ref[0]                                            # (C, TM) f32

    # t = Wqk @ x_tile   (bf16 MXU operands, f32 accumulation).
    t = jnp.dot(wqk_ref[...], x_tile.astype(jnp.bfloat16),
                preferred_element_type=jnp.float32)               # (C, TM) f32

    # attn[n, j] = sum_c x[c, n] * t[c, j]  — canonical (N,C)x(C,TM) matmul.
    attn = jnp.dot(xt_ref[0], t.astype(jnp.bfloat16),
                   preferred_element_type=jnp.float32)            # (N, TM) f32

    # Column softmax (torch dim=1 == axis 0 here); normalization deferred.
    attn = attn - jnp.max(attn, axis=0, keepdims=True)
    p = jnp.exp(attn)                                             # (N, TM) f32
    colsum = jnp.sum(p, axis=0, keepdims=True)                    # (1, TM)

    # Unnormalized output: h @ p  -> (C, TM), bf16 MXU operands.
    o_un = jnp.dot(h_ref[0], p.astype(jnp.bfloat16),
                   preferred_element_type=jnp.float32)

    inv = pl.reciprocal(colsum, approx=False)                     # exact 1/x
    o_ref[0] = gamma_ref[0, 0] * (o_un * inv) + x_tile


def self_attention(x, wq, wk, wv, gamma, *, tm=256):
    """x: (B, C, H, W) f32; wq/wk: (C//8, C); wv: (C, C); gamma: scalar."""
    B, C, H, W = x.shape
    N = H * W
    assert N % 128 == 0 and C % 8 == 0, "tile alignment: N%128==0, C%8==0"
    tm = min(tm, N)
    assert tm % 128 == 0 and N % tm == 0

    xf = x.reshape(B, C, N).astype(jnp.float32)

    # Hoisted per-batch caches (O(C^2 * N) work, negligible vs O(C * N^2)):
    #   fused q/k weight: attn = f^T g = x^T (Wq^T Wk) x = x^T (Wqk x)
    wqk = jnp.dot(wq.astype(jnp.float32).T,
                  wk.astype(jnp.float32)).astype(jnp.bfloat16)    # (C, C)
    #   value projection h = Wv @ x, bf16 (consumed by bf16 MXU anyway)
    h = jnp.einsum('oc,bcn->bon', wv.astype(jnp.float32),
                   xf).astype(jnp.bfloat16)                       # (B, C, N)
    #   key-side x cache, transposed so the big matmul contracts the last dim
    xt = jnp.transpose(xf, (0, 2, 1)).astype(jnp.bfloat16)        # (B, N, C)

    gamma2d = jnp.reshape(gamma, (1, 1)).astype(jnp.float32)

    # Resident-VMEM estimate per grid step:
    #   bf16 xt + h (double-buffered, constant index per batch)
    #   f32 query tile in + output tile out (double-buffered)
    #   bf16 Wqk, f32 (N, tm) attn/p + bf16 p, (C, tm) f32 intermediates.
    est = (4 * C * N * 2
           + 4 * C * tm * 4
           + 2 * C * C * 2
           + 14 * N * tm
           + 4 * C * tm * 4)
    # Cap at 48 MiB: leaves headroom inside v7x's 64 MiB per-TC VMEM.
    vmem_limit = int(min(max(2 * est, 32 * 1024 * 1024), 48 * 1024 * 1024))

    out = pl.pallas_call(
        _self_attention_kernel,
        out_shape=jax.ShapeDtypeStruct((B, C, N), jnp.float32),
        grid_spec=pltpu.PrefetchScalarGridSpec(
            num_scalar_prefetch=0,
            grid=(B, N // tm),
            in_specs=[
                pl.BlockSpec((1, N, C), lambda b, m: (b, 0, 0)),    # x^T bf16
                pl.BlockSpec((1, C, N), lambda b, m: (b, 0, 0)),    # h bf16
                pl.BlockSpec((1, C, tm), lambda b, m: (b, 0, m)),   # x f32 tile
                pl.BlockSpec((C, C), lambda b, m: (0, 0)),          # Wqk bf16
                pl.BlockSpec(memory_space=pltpu.MemorySpace.SMEM),  # gamma
            ],
            out_specs=pl.BlockSpec((1, C, tm), lambda b, m: (b, 0, m)),
        ),
        compiler_params=pltpu.CompilerParams(
            # No cross-m scratch dependency anymore: both axes are parallel,
            # letting v7x split the m (query-tile) axis across its two TCs.
            dimension_semantics=("parallel", "parallel"),
            vmem_limit_bytes=vmem_limit),
    )(xt, h, xf, wqk, gamma2d)

    return out.reshape(B, C, H, W).astype(x.dtype)


def _spectral_normalize(w):
    # nn.utils.spectral_norm divides the (out, in) conv weight by its largest
    # singular value (power iteration in PyTorch); exact SVD here (setup only).
    sigma = jnp.linalg.svd(w, compute_uv=False)[0]
    return w / sigma


def _reference(x, wq, wk, wv, gamma):
    """Pure-JAX f32 reference matching the PyTorch forward."""
    B, C, H, W = x.shape
    xf = x.reshape(B, C, H * W)
    f = jnp.einsum('oc,bcn->bon', wq, xf)
    g = jnp.einsum('oc,bcn->bon', wk, xf)
    h = jnp.einsum('oc,bcn->bon', wv, xf)
    attn = jnp.einsum('bkn,bkm->bnm', f, g)      # bmm(f^T, g)
    beta = jax.nn.softmax(attn, axis=1)          # dim=1
    o = gamma * jnp.einsum('bcn,bnm->bcm', h, beta) + xf
    return o.reshape(B, C, H, W)


if __name__ == "__main__":
    key = jax.random.PRNGKey(0)
    B, C, H, W = 2, 32, 16, 16          # n_channels divisible by 8; N = 256
    C8 = C // 8

    kx, kq, kk, kv = jax.random.split(key, 4)
    x = jax.random.normal(kx, (B, C, H, W), jnp.float32)

    # kaiming_normal_ on a (out, in, 1) conv weight: std = sqrt(2 / fan_in).
    std = (2.0 / C) ** 0.5
    wq = _spectral_normalize(jax.random.normal(kq, (C8, C), jnp.float32) * std)
    wk = _spectral_normalize(jax.random.normal(kk, (C8, C), jnp.float32) * std)
    wv = _spectral_normalize(jax.random.normal(kv, (C, C), jnp.float32) * std)

    # Module's __init__ sets gamma = 0.0 (forward == identity); use a nonzero
    # value so the attention path is exercised.
    gamma = jnp.float32(0.5)

    # tm=128 -> 2 query tiles per batch element: exercises the multi-tile
    # output path and the per-batch resident xt / h caches.
    out = jax.block_until_ready(self_attention(x, wq, wk, wv, gamma, tm=128))
    ref = _reference(x, wq, wk, wv, gamma)

    assert out.shape == x.shape
    max_err = float(jnp.max(jnp.abs(out - ref)))
    # bf16 MXU operands (f32 accumulation) -> relaxed tolerance vs f32 ref.
    assert jnp.allclose(out, ref, atol=3e-2, rtol=3e-2), max_err
    print("KERNEL_OK")
</pallas_src>

<mosaic_0001>
module attributes {stable_mosaic.version = 11 : i64} {
  func.func @_self_attention_kernel(%arg0: i32, %arg1: i32, %arg2: memref<1x256x32xbf16, #tpu.memory_space<vmem>>, %arg3: memref<1x32x256xbf16, #tpu.memory_space<vmem>>, %arg4: memref<1x32x128xf32, #tpu.memory_space<vmem>>, %arg5: memref<32x32xbf16, #tpu.memory_space<vmem>>, %arg6: memref<1x1xf32, #tpu.memory_space<smem>>, %arg7: memref<1x32x128xf32, #tpu.memory_space<vmem>>) attributes {dimension_semantics = [#tpu.dimension_semantics<parallel>, #tpu.dimension_semantics<parallel>], iteration_bounds = array<i64: 2, 2>, scalar_prefetch = 0 : i64, scratch_operands = 0 : i64, tpu.core_type = #tpu.core_type<tc>, window_params = [{transform_indices = @transform_0, window_bounds = array<i64: 1, 256, 32>}, {transform_indices = @transform_1, window_bounds = array<i64: 1, 32, 256>}, {transform_indices = @transform_2, window_bounds = array<i64: 1, 32, 128>}, {pipeline_mode = #tpu.pipeline_mode<synchronous>, transform_indices = @transform_3, window_bounds = array<i64: 32, 32>}, {transform_indices = @transform_4, window_bounds = array<i64: 1, 1>}, {transform_indices = @transform_5, window_bounds = array<i64: 1, 32, 128>}]} {
    %c0 = arith.constant 0 : index
    %c0_0 = arith.constant 0 : index
    %c0_1 = arith.constant 0 : index
    %0 = vector.load %arg4[%c0, %c0_0, %c0_1] : memref<1x32x128xf32, #tpu.memory_space<vmem>>, vector<1x32x128xf32>
    %1 = vector.shape_cast %0 : vector<1x32x128xf32> to vector<32x128xf32>
    %c0_2 = arith.constant 0 : index
    %c0_3 = arith.constant 0 : index
    %2 = vector.load %arg5[%c0_2, %c0_3] : memref<32x32xbf16, #tpu.memory_space<vmem>>, vector<32x32xbf16>
    %3 = arith.truncf %1 : vector<32x128xf32> to vector<32x128xbf16>
    %cst = arith.constant dense<0.000000e+00> : vector<32x128xf32>
    %4 = tpu.matmul %2, %3, %cst {dimension_numbers = #tpu.dot_dimension_numbers<[1], [0], [0], [1], [0, 0, 1, 1], [], []>} : vector<32x32xbf16>, vector<32x128xbf16>, vector<32x128xf32> -> vector<32x128xf32>
    %c0_4 = arith.constant 0 : index
    %c0_5 = arith.constant 0 : index
    %c0_6 = arith.constant 0 : index
    %5 = vector.load %arg2[%c0_4, %c0_5, %c0_6] : memref<1x256x32xbf16, #tpu.memory_space<vmem>>, vector<1x256x32xbf16>
    %6 = vector.shape_cast %5 : vector<1x256x32xbf16> to vector<256x32xbf16>
    %7 = arith.truncf %4 : vector<32x128xf32> to vector<32x128xbf16>
    %cst_7 = arith.constant dense<0.000000e+00> : vector<256x128xf32>
    %8 = tpu.matmul %6, %7, %cst_7 {dimension_numbers = #tpu.dot_dimension_numbers<[1], [0], [0], [1], [0, 0, 1, 1], [], []>} : vector<256x32xbf16>, vector<32x128xbf16>, vector<256x128xf32> -> vector<256x128xf32>
    %cst_8 = arith.constant dense<0xFF800000> : vector<128xf32>
    %9 = vector.multi_reduction <maximumf>, %8, %cst_8 [0] : vector<256x128xf32> to vector<128xf32>
    %10 = vector.shape_cast %9 : vector<128xf32> to vector<1x128xf32>
    %11 = vector.broadcast %10 : vector<1x128xf32> to vector<256x128xf32>
    %12 = arith.subf %8, %11 : vector<256x128xf32>
    %13 = math.exp %12 : vector<256x128xf32>
    %cst_9 = arith.constant dense<0.000000e+00> : vector<128xf32>
    %14 = vector.multi_reduction <add>, %13, %cst_9 [0] : vector<256x128xf32> to vector<128xf32>
    %15 = vector.shape_cast %14 : vector<128xf32> to vector<1x128xf32>
    %c0_10 = arith.constant 0 : index
    %c0_11 = arith.constant 0 : index
    %c0_12 = arith.constant 0 : index
    %16 = vector.load %arg3[%c0_10, %c0_11, %c0_12] : memref<1x32x256xbf16, #tpu.memory_space<vmem>>, vector<1x32x256xbf16>
    %17 = vector.shape_cast %16 : vector<1x32x256xbf16> to vector<32x256xbf16>
    %18 = arith.truncf %13 : vector<256x128xf32> to vector<256x128xbf16>
    %cst_13 = arith.constant dense<0.000000e+00> : vector<32x128xf32>
    %19 = tpu.matmul %17, %18, %cst_13 {dimension_numbers = #tpu.dot_dimension_numbers<[1], [0], [0], [1], [0, 0, 1, 1], [], []>} : vector<32x256xbf16>, vector<256x128xbf16>, vector<32x128xf32> -> vector<32x128xf32>
    %20 = tpu.reciprocal %15 : vector<1x128xf32> -> vector<1x128xf32>
    %c0_14 = arith.constant 0 : index
    %c0_15 = arith.constant 0 : index
    %21 = memref.load %arg6[%c0_14, %c0_15] : memref<1x1xf32, #tpu.memory_space<smem>>
    %22 = vector.broadcast %20 : vector<1x128xf32> to vector<32x128xf32>
    %23 = arith.mulf %19, %22 : vector<32x128xf32>
    %24 = vector.broadcast %21 : f32 to vector<32x128xf32>
    %25 = arith.mulf %24, %23 : vector<32x128xf32>
    %26 = arith.addf %25, %1 : vector<32x128xf32>
    %c0_16 = arith.constant 0 : index
    %c0_17 = arith.constant 0 : index
    %c0_18 = arith.constant 0 : index
    %27 = vector.load %arg7[%c0_16, %c0_17, %c0_18] : memref<1x32x128xf32, #tpu.memory_space<vmem>>, vector<1x32x128xf32>
    %28 = vector.shape_cast %27 : vector<1x32x128xf32> to vector<32x128xf32>
    %29 = vector.shape_cast %26 : vector<32x128xf32> to vector<1x32x128xf32>
    tpu.vector_store %arg7[%c0_16, %c0_17, %c0_18], %29 {strides = array<i32>} : memref<1x32x128xf32, #tpu.memory_space<vmem>>, vector<1x32x128xf32>,
    return
  }
  func.func @transform_0(%arg0: i32, %arg1: i32) -> (i32, i32, i32) {
    %c0_i32 = arith.constant 0 : i32
    %c0_i32_0 = arith.constant 0 : i32
    %c0_i32_1 = arith.constant 0 : i32
    return %arg0, %c0_i32, %c0_i32_0 : i32, i32, i32
  }
  func.func @transform_1(%arg0: i32, %arg1: i32) -> (i32, i32, i32) {
    %c0_i32 = arith.constant 0 : i32
    %c0_i32_0 = arith.constant 0 : i32
    %c0_i32_1 = arith.constant 0 : i32
    return %arg0, %c0_i32, %c0_i32_0 : i32, i32, i32
  }
  func.func @transform_2(%arg0: i32, %arg1: i32) -> (i32, i32, i32) {
    %c0_i32 = arith.constant 0 : i32
    %c0_i32_0 = arith.constant 0 : i32
    return %arg0, %c0_i32, %arg1 : i32, i32, i32
  }
  func.func @transform_3(%arg0: i32, %arg1: i32) -> (i32, i32) {
    %c0_i32 = arith.constant 0 : i32
    %c0_i32_0 = arith.constant 0 : i32
    %c0_i32_1 = arith.constant 0 : i32
    return %c0_i32, %c0_i32_0 : i32, i32
  }
  func.func @transform_4(%arg0: i32, %arg1: i32) -> (i32, i32) {
    %c0_i32 = arith.constant 0 : i32
    %c0_i32_0 = arith.constant 0 : i32
    %c0_i32_1 = arith.constant 0 : i32
    return %c0_i32, %c0_i32_0 : i32, i32
  }
  func.func @transform_5(%arg0: i32, %arg1: i32) -> (i32, i32, i32) {
    %c0_i32 = arith.constant 0 : i32
    %c0_i32_0 = arith.constant 0 : i32
    return %arg0, %c0_i32, %arg1 : i32, i32, i32
  }
}

</mosaic_0001>

<bundles_post_ra>
// kernel: tpu_custom_call.1
= control target key start
LH: loop header
LB: loop body
LE: loop exit
PB: predicated region body
PF: predicated region fallthrough
CT: control target
= control target key end

     0   :  { %s2091_s0 = inlined_call_operand.vmem [shape: bf16[2,256,32], index: 0, kind: input, shape index: {}]   ;;  %s2092_s1 = inlined_call_operand.vmem [shape: bf16[2,32,256], index: 1, kind: input, shape index: {}]   ;;  %s2093_s2 = inlined_call_operand.vmem [shape: f32[2,32,256], index: 2, kind: input, shape index: {}]   ;;  %s2094_s3 = inlined_call_operand.vmem [shape: bf16[32,32], index: 3, kind: input, shape index: {}]   ;;  %s2095_s4 = inlined_call_operand.<no memory space> [shape: f32[1,1], index: 4, kind: input, shape index: {}]   ;;  %s2096_s5 = inlined_call_operand.hbm [shape: f32[2,32,256], index: 5, kind: output, shape index: {}]  }
   0x1   :  { %10 = sst [smem:[#allocation2]] %s2095_s4 }
   0x2   :  { %11 = vsyncpa [#allocation5], 0 }
   0x3   :  { %13 = vsyncpa [#allocation5 + $0x1], 0  ;;  %s1580_s20 = smov 0   ;;  %s1582_s21 = smov 0  }
   0x4   :  { %s1584_s22 = smov 0   ;;  %s1586_s23 = smov 0  }
   0x5   :  { %s1588_s24 = smov 0   ;;  %s1590_s25 = smov 0  }
   0x6   :  { %s1592_s26 = smov 0   ;;  %s1594_s27 = smov 0  }
   0x7 LB: > { %s1128_s4 = sadd.s32 4294967295, %s1541_s27   ;;  %s1129_s28 = sadd.s32 4294967294, %s1541_s27   ;;  %s1541_s27 = sphi %s1594_s27, %s19_s27   ;;  %s1537_s26 = sphi %s1592_s26, %s2106_s26   ;;  %s1533_s25 = sphi %s1590_s25, %s2105_s25   ;;  %s1529_s24 = sphi %s1588_s24, %s2104_s24   ;;  %s1525_s23 = sphi %s1586_s23, %s2103_s23   ;;  %s1521_s22 = sphi %s1584_s22, %s2102_s22   ;;  %s1517_s21 = sphi %s1582_s21, %s2101_s21   ;;  %s1513_s20 = sphi %s1580_s20, %s2100_s20  }
   0x8   : > { %s28_s29 = sadd.s32 1, %s1533_s25  ;;  %s31_s30 = sadd.s32 1, %s1537_s26 }
   0x9   : > { %p29_p0 = scmp.ge.s32.totalorder %s28_s29, 2  ;;  %p99_p1 = scmp.ne.s32.totalorder %s1521_s22, %s1517_s21 }
   0xa   : > { %p100_p2 = scmp.eq.s32.totalorder %s1541_s27, 0  ;;  %p173_p5 = scmp.eq.s32.totalorder %s1128_s4, 3 }
   0xb   : > { %s2108_s29 = smov (%p29_p0, %s28_s29), 0  ;;  %s2110_s30 = smov (!%p29_p0, %s31_s30), %s1537_s26 }
   0xc   : > { %s88_s6 = ssub.s32 %s1533_s25, %s2108_s29  ;;  %p1632_p3 = por %p100_p2, %p99_p1 }
   0xd   : > { %p33_p4 = scmp.ge.s32.totalorder %s2110_s30, 2  ;;  %p178_p6 = scmp.ne.s32.totalorder %s1517_s21, %s1513_s20 }
   0xe   : > { %p179_p7 = scmp.eq.s32.totalorder %s1129_s28, 3  ;;  %p1640_p8 = por %p173_p5, %p99_p1 }
   0xf   : > { %s2112_s30 = smov (%p33_p4, %s2110_s30), 0  ;;  %s92_s12 = sadd.s32 1, %s1521_s22 }
  0x10   : > { %p1644_p9 = por %p179_p7, %p178_p6  ;;  %s87_s10 = ssub.s32 %s1537_s26, %s2112_s30 }
  0x11   : > { %s89_s11 = sor.u32 %s88_s6, %s87_s10  ;;  %p1131_p11 = scmp.ge.s32.totalorder %s1541_s27, 4 }
  0x12   : > { %p90_p10 = scmp.eq.s32.totalorder %s89_s11, 0 }
  0x13   : > { %201 = sbr.rel (%p1131_p11) target bundleno = 34 (0x22), region = 24 }
  0x14   : > { %s1652_s13 = scalar_select %p90_p10, %s1521_s22, %s92_s12  }
  0x1a   : > { %220 = sbr.rel (!%p1632_p3) target bundleno = 34 (0x22), region = 36  ;;  %s222_s14 = sand.u32 (%p1632_p3), 1, %s1521_s22  }
  0x1b   : > { %s1133_s15 = sshll.u32 (%p1632_p3), %s1537_s26, 3  ;;  %s1132_s16 = sshll.u32 (%p1632_p3), %s222_s14, 5 }
  0x1c   : > { %s226_s17 = sadd.s32 (%p1632_p3), %s1533_s25, %s1133_s15  ;;  %s224_s6 = scalar_lea.vmem (%p1632_p3), [#allocation3], %s1132_s16 }
  0x1d   : > { %s1134_s18 = sshll.u32 (%p1632_p3), %s226_s17, 3 }
  0x1e   : > { %s228_s28 = scalar_lea.vmem (%p1632_p3), %s2093_s2, %s1134_s18 }
  0x1f   : > { %v262_v0 = vld [vmem:[%s228_s28] sm:$0xff] (%p1632_p3)  ;;  %v264_v1 = vld [vmem:[%s228_s28 + $0x10] sm:$0xff] (%p1632_p3) }
  0x20   : > { %v266_v2 = vld [vmem:[%s228_s28 + $0x20] sm:$0xff] (%p1632_p3)  ;;  %263 = vst [vmem:[%s224_s6] sm:$0xff] (%p1632_p3), %v262_v0  ;;  %265 = vst [vmem:[%s224_s6 + $0x8] sm:$0xff] (%p1632_p3), %v264_v1  ;;  %v268_v3 = vld [vmem:[%s228_s28 + $0x30] sm:$0xff] (%p1632_p3) }
  0x21   : > { %267 = vst [vmem:[%s224_s6 + $0x10] sm:$0xff] %v266_v2  ;;  %269 = vst [vmem:[%s224_s6 + $0x18] sm:$0xff] %v268_v3 }
  0x22 PF: > { %p1135_p12 = scmp.ge.s32.totalorder %s1541_s27, 1  ;;  %p274_p13 = scmp.lt.s32.totalorder %s1541_s27, 5 }
  0x24   : > { %p275_p0 = pnand %p1135_p12, %p274_p13 }
  0x25   : > { %s281_s7 = sand.u32 (!%p275_p0), 1, %s1517_s21   ;;  %v1357_v4 = vld [vmem:[%s2094_s3] sm:$0xff] (!%p275_p0)   ;;  %vm349_vm0 = vcmask (!%p275_p0), 261120   ;;  %v1358_v11 = vld [vmem:[%s2094_s3 + $0x8] sm:$0xff] (!%p275_p0)   ;;  %p318_p1 = scmp.lt.s32.totalorder (!%p275_p0), %s1529_s24, 1 }
  0x26   : > { %278 = sbr.rel (%p275_p0) target bundleno = 884 (0x374), region = 74  ;;  %s1671_s12 = sshll.u32 (!%p275_p0), %s281_s7, 5  ;;  %1243 = vmatprep.mubr.msk.bf16.mxu0 (!%p275_p0), %vm349_vm0, %v1357_v4 }
  0x27   : > { %s283_s14 = scalar_lea.vmem (!%p275_p0), [#allocation3], %s1671_s12  ;;  %s988_s15 = sld [smem:[#allocation2]] (!%p275_p0) }
  0x28   : > { %v1675_v5 = vld [vmem:[%s283_s14] sm:$0xff] (!%p275_p0)  ;;  %v1677_v6 = vld [vmem:[%s283_s14 + $0x8] sm:$0xff] (!%p275_p0)  ;;  %v1679_v7 = vld [vmem:[%s283_s14 + $0x10] sm:$0xff] (!%p275_p0)  ;;  %s1183_s16 = sshll.u32 (!%p275_p0), %s1529_s24, 3  ;;  %s1543_s10 = smov (!%p275_p0), [#allocation4]  }
  0x29   : > { %v337_v8 = vpack.c.bf16 (!%p275_p0), %v1677_v6, %v1675_v5  ;;  %v1683_v9 = vld [vmem:[%s283_s14 + $0x18] sm:$0xff] (!%p275_p0)  ;;  %s1451_s11 = sshll.u32 (!%p275_p0), %s1543_s10, 4  ;;  %s1452_s11 = int_to_ptr.vmem [resolvable:$false] %s1451_s11 }
  0x2a   : > { %v338_v10 = vpack.c.bf16 (!%p275_p0), %v1683_v9, %v1679_v7 }
  0x2b   : > { %1239 = vmatprep.subr.bf16.mxu0 (!%p275_p0), %v337_v8 }
  0x2c   : > { %1240 = vmatpush3.bf16.msra.mxu0 (!%p275_p0), %v337_v8 }
  0x2d   : > { %1241 = vmatprep.subr.bf16.mxu0 %v338_v10  ;;  %s1693_s17 = scalar_select %p318_p1, %s1529_s24, 1 }
  0x2f   : > { %s1187_s18 = sshll.u32 %s1693_s17, 7  ;;  %s1188_s6 = sshll.u32 %s1693_s17, 5 }
  0x30   : > { %1242 = vmatpush3.bf16.msra.mxu0 %v338_v10  ;;  %s1699_s28 = scalar_lea.vmem %s2091_s0, %s1187_s18  ;;  %s1787_s14 = scalar_lea.vmem %s2092_s1, %s1188_s6 }
  0x31   : > { %v1359_v12 = vld [vmem:[%s1699_s28] sm:$0xff]   ;;  %v1360_v19 = vld [vmem:[%s1699_s28 + $0x8] sm:$0xff]   ;;  %v1361_v20 = vld [vmem:[%s1699_s28 + $0x10] sm:$0xff]   ;;  %s317_s17 = scalar_lea.vmem [#allocation4], %s1671_s12  ;;  %s1018_s18 = sadd.s32 %s1525_s23, %s1183_s16 }
  0x32   : > { %1251 = vmatprep.mubr.msk.bf16.mxu1 %vm349_vm0, %v1359_v12  ;;  %v1362_v21 = vld [vmem:[%s1699_s28 + $0x18] sm:$0xff]   ;;  %v1363_v22 = vld [vmem:[%s1699_s28 + $0x20] sm:$0xff]   ;;  %v1364_v23 = vld [vmem:[%s1699_s28 + $0x28] sm:$0xff]   ;;  %s1021_s19 = sshll.u32 %s317_s17, 4  ;;  %s1184_s4 = sshll.u32 %s1018_s18, 7  ;;  %s2028_s19 = int_to_ptr.vmem [resolvable:$true] %s1021_s19 }
  0x33   : > { %1244 = vmatmul.mubr.msk.bf16.vlgmr.msra.gmra.mrb[0].mxu0 %vm349_vm0, %v1358_v11  ;;  %v1365_v24 = vld [vmem:[%s1699_s28 + $0x30] sm:$0xff]   ;;  %v1366_v25 = vld [vmem:[%s1699_s28 + $0x38] sm:$0xff]   ;;  %v1367_v26 = vld [vmem:[%s1699_s28 + $0x40] sm:$0xff]   ;;  %s2039_s23 = scalar_lea.sflag [#allocation5], %s281_s7  ;;  %s1447_s6 = scalar_lea.vmem %s2028_s19, 512 }
  0x34   : > { %v1368_v27 = vld [vmem:[%s1699_s28 + $0x48] sm:$0xff]   ;;  %v1369_v28 = vld [vmem:[%s1699_s28 + $0x50] sm:$0xff]   ;;  %v1370_v29 = vld [vmem:[%s1699_s28 + $0x58] sm:$0xff]   ;;  %p1448_p2 = scmp.ne.s32.totalorder %s2028_s19, %s1447_s6  ;;  %p1454_p5 = scmp.lt.s32.totalorder %s2028_s19, %s1452_s11 }
  0x35   : > { %v1371_v30 = vld [vmem:[%s1699_s28 + $0x60] sm:$0xff]   ;;  %v1372_v31 = vld [vmem:[%s1699_s28 + $0x68] sm:$0xff]   ;;  %v1373_v32 = vld [vmem:[%s1699_s28 + $0x70] sm:$0xff]  }
  0x36   : > { %v1374_v33 = vld [vmem:[%s1699_s28 + $0x78] sm:$0xff]   ;;  %v1377_v1 = vld [vmem:[%s1787_s14 + $0x4] ss:$8 sps:$4 sm:$0xff]   ;;  %s2035_s28 = scalar_lea.hbm %s2096_s5, %s1184_s4  ;;  %p1449_p3 = pnand %p1448_p2, %p1640_p8 }
  0x37   : > { %970 = vmatprep.mubr.bf16.mxu0 %v1377_v1 }
  0x38   : > { %p1450_p4 = pneg %p1449_p3 }
 0x106   : > { %v1245_v13 = vpop.f32.mrb[0].mxu0 }
 0x107   : > { %v390_v14 = vpop.f32.mrb[1].mxu0 }
 0x108   : > { %v1246_v15 = vpop.f32.mrb[2].mxu0 }
 0x109   : > { %v438_v16 = vpack.c.bf16 %v1246_v15, %v1245_v13  ;;  %v393_v17 = vpop.f32.mrb[3].mxu0 }
 0x10a   : > { %v437_v18 = vpack.c.bf16 %v393_v17, %v390_v14 }
 0x10c   : > { %1247 = vmatprep.subr.bf16.mxu1 %v437_v18 }
 0x10d   : > { %1248 = vmatpush3.bf16.msra.mxu1 %v437_v18 }
 0x10e   : > { %1249 = vmatprep.subr.bf16.mxu1 %v438_v16 }
 0x111   : > { %1250 = vmatpush3.bf16.msra.mxu1 %v438_v16 }
 0x114   : > { %1252 = vmatmul.mubr.msk.bf16.vlgmr.msra.gmra.mrb[0].mxu1 %vm349_vm0, %v1360_v19 }
 0x115   : > { %1255 = vmatprep.mubr.msk.bf16.mxu1 %vm349_vm0, %v1361_v20 }
 0x11c   : > { %1256 = vmatmul.mubr.msk.bf16.gmra.mrb[4].mxu1 %vm349_vm0, %v1362_v21 }
 0x11d   : > { %1259 = vmatprep.mubr.msk.bf16.mxu1 %vm349_vm0, %v1363_v22 }
 0x124   : > { %1260 = vmatmul.mubr.msk.bf16.gmra.mrb[8].mxu1 %vm349_vm0, %v1364_v23 }
 0x125   : > { %1263 = vmatprep.mubr.msk.bf16.mxu1 %vm349_vm0, %v1365_v24 }
 0x12c   : > { %1264 = vmatmul.mubr.msk.bf16.gmra.mrb[12].mxu1 %vm349_vm0, %v1366_v25 }
 0x12d   : > { %1267 = vmatprep.mubr.msk.bf16.mxu1 %vm349_vm0, %v1367_v26 }
 0x134   : > { %1268 = vmatmul.mubr.msk.bf16.gmra.mrb[16].mxu1 %vm349_vm0, %v1368_v27 }
 0x135   : > { %1271 = vmatprep.mubr.msk.bf16.mxu1 %vm349_vm0, %v1369_v28 }
 0x13c   : > { %1272 = vmatmul.mubr.msk.bf16.gmra.mrb[20].mxu1 %vm349_vm0, %v1370_v29 }
 0x13d   : > { %1275 = vmatprep.mubr.msk.bf16.mxu1 %vm349_vm0, %v1371_v30 }
 0x144   : > { %1276 = vmatmul.mubr.msk.bf16.gmra.mrb[24].mxu1 %vm349_vm0, %v1372_v31 }
 0x145   : > { %1279 = vmatprep.mubr.msk.bf16.mxu1 %vm349_vm0, %v1373_v32 }
 0x14c   : > { %1280 = vmatmul.mubr.msk.bf16.gmra.mrb[28].mxu1 %vm349_vm0, %v1374_v33 }
 0x1e7   : > { %v1733_v34 = vpop.f32.mrb[0].mxu1 }
 0x1e8   : > { %v1735_v35 = vpop.f32.mrb[1].mxu1 }
 0x1e9   : > { %v1737_v36 = vpop.f32.mrb[2].mxu1 }
 0x1ea   : > { %v1739_v37 = vpop.f32.mrb[3].mxu1 }
 0x1ef   : > { %v1741_v38 = vpop.f32.mrb[4].mxu1 }
 0x1f0   : > { %v730_v39 = vmax.f32 %v1733_v34, %v1741_v38  ;;  %v1745_v40 = vpop.f32.mrb[5].mxu1 }
 0x1f1   : > { %v728_v41 = vmax.f32 %v1735_v35, %v1745_v40  ;;  %v1749_v42 = vpop.f32.mrb[6].mxu1 }
 0x1f2   : > { %v731_v43 = vmax.f32 %v1737_v36, %v1749_v42  ;;  %v1753_v44 = vpop.f32.mrb[7].mxu1 }
 0x1f3   : > { %v729_v45 = vmax.f32 %v1739_v37, %v1753_v44 }
 0x1f7   : > { %v1757_v46 = vpop.f32.mrb[8].mxu1 }
 0x1f8   : > { %v734_v47 = vmax.f32 %v730_v39, %v1757_v46  ;;  %v1760_v48 = vpop.f32.mrb[9].mxu1 }
 0x1f9   : > { %v732_v49 = vmax.f32 %v728_v41, %v1760_v48  ;;  %v1763_v50 = vpop.f32.mrb[10].mxu1 }
 0x1fa   : > { %v735_v51 = vmax.f32 %v731_v43, %v1763_v50  ;;  %v1766_v52 = vpop.f32.mrb[11].mxu1 }
 0x1fb   : > { %v733_v53 = vmax.f32 %v729_v45, %v1766_v52 }
 0x1ff   : > { %v1769_v54 = vpop.f32.mrb[12].mxu1 }
 0x200   : > { %v738_v55 = vmax.f32 %v734_v47, %v1769_v54  ;;  %v1772_v56 = vpop.f32.mrb[13].mxu1 }
 0x201   : > { %v736_v57 = vmax.f32 %v732_v49, %v1772_v56  ;;  %v1775_v58 = vpop.f32.mrb[14].mxu1 }
 0x202   : > { %v739_v59 = vmax.f32 %v735_v51, %v1775_v58  ;;  %v1778_v60 = vpop.f32.mrb[15].mxu1 }
 0x203   : > { %v737_v61 = vmax.f32 %v733_v53, %v1778_v60 }
 0x207   : > { %v1782_v62 = vpop.f32.mrb[16].mxu1 }
 0x208   : > { %v742_v63 = vmax.f32 %v738_v55, %v1782_v62  ;;  %v1790_v0 = vpop.f32.mrb[17].mxu1 }
 0x209   : > { %v740_v2 = vmax.f32 %v736_v57, %v1790_v0  ;;  %v1794_v3 = vpop.f32.mrb[18].mxu1 }
 0x20a   : > { %v743_v4 = vmax.f32 %v739_v59, %v1794_v3  ;;  %v1797_v8 = vpop.f32.mrb[19].mxu1 }
 0x20b   : > { %v741_v10 = vmax.f32 %v737_v61, %v1797_v8 }
 0x20f   : > { %v1800_v11 = vpop.f32.mrb[20].mxu1 }
 0x210   : > { %v746_v12 = vmax.f32 %v742_v63, %v1800_v11  ;;  %v1803_v13 = vpop.f32.mrb[21].mxu1 }
 0x211   : > { %v744_v14 = vmax.f32 %v740_v2, %v1803_v13  ;;  %v1806_v15 = vpop.f32.mrb[22].mxu1 }
 0x212   : > { %v747_v16 = vmax.f32 %v743_v4, %v1806_v15  ;;  %v1809_v17 = vpop.f32.mrb[23].mxu1 }
 0x213   : > { %v745_v18 = vmax.f32 %v741_v10, %v1809_v17 }
 0x217   : > { %v1812_v19 = vpop.f32.mrb[24].mxu1 }
 0x218   : > { %v750_v20 = vmax.f32 %v746_v12, %v1812_v19  ;;  %v1815_v21 = vpop.f32.mrb[25].mxu1 }
 0x219   : > { %v748_v22 = vmax.f32 %v744_v14, %v1815_v21  ;;  %v1818_v23 = vpop.f32.mrb[26].mxu1 }
 0x21a   : > { %v751_v24 = vmax.f32 %v747_v16, %v1818_v23  ;;  %v1821_v25 = vpop.f32.mrb[27].mxu1 }
 0x21b   : > { %v749_v26 = vmax.f32 %v745_v18, %v1821_v25 }
 0x21f   : > { %v1824_v27 = vpop.f32.mrb[28].mxu1 }
 0x220   : > { %v754_v28 = vmax.f32 %v750_v20, %v1824_v27  ;;  %v1827_v29 = vpop.f32.mrb[29].mxu1 }
 0x221   : > { %v752_v30 = vmax.f32 %v748_v22, %v1827_v29  ;;  %v1830_v31 = vpop.f32.mrb[30].mxu1 }
 0x222   : > { %v755_v32 = vmax.f32 %v751_v24, %v1830_v31  ;;  %v1833_v33 = vpop.f32.mrb[31].mxu1 }
 0x223   : > { %v753_v39 = vmax.f32 %v749_v26, %v1833_v33 }
 0x224   : > { %v757_v41 = vmax.f32 %v754_v28, %v755_v32 }
 0x225   : > { %v756_v43 = vmax.f32 %v752_v30, %v753_v39 }
 0x227   : > { %v758_v45 = vmax.f32 %v756_v43, %v757_v41 }
 0x229   : > { %v759_v47 = vrot.slane %v758_v45, 4 }
 0x22b   : > { %v760_v49 = vmax.f32 %v758_v45, %v759_v47 }
 0x22d   : > { %v761_v51 = vrot.slane %v760_v49, 2 }
 0x22f   : > { %v762_v53 = vmax.f32 %v760_v49, %v761_v51 }
 0x231   : > { %v763_v55 = vrot.slane %v762_v53, 1 }
 0x233   : > { %v1836_v57 = vmax.f32 %v762_v53, %v763_v55 }
 0x235   : > { %v765_v59 = vsub.f32 %v1735_v35, %v1836_v57  ;;  %v766_v61 = vsub.f32 %v1739_v37, %v1836_v57  ;;  %v767_v63 = vsub.f32 %v1733_v34, %v1836_v57  ;;  %v768_v1 = vsub.f32 %v1737_v36, %v1836_v57 }
 0x236   : > { %v769_v2 = vsub.f32 %v1745_v40, %v1836_v57  ;;  %v770_v4 = vsub.f32 %v1753_v44, %v1836_v57  ;;  %v771_v10 = vsub.f32 %v1741_v38, %v1836_v57  ;;  %v772_v35 = vsub.f32 %v1749_v42, %v1836_v57 }
 0x237   : > { %v773_v37 = vsub.f32 %v1760_v48, %v1836_v57  ;;  %v774_v34 = vsub.f32 %v1766_v52, %v1836_v57  ;;  %v775_v36 = vsub.f32 %v1757_v46, %v1836_v57  ;;  %v776_v40 = vsub.f32 %v1763_v50, %v1836_v57 }
 0x238   : > { %v777_v44 = vsub.f32 %v1772_v56, %v1836_v57  ;;  %v778_v38 = vsub.f32 %v1778_v60, %v1836_v57  ;;  %v779_v42 = vsub.f32 %v1769_v54, %v1836_v57  ;;  %v780_v48 = vsub.f32 %v1775_v58, %v1836_v57 }
 0x239   : > { %v781_v52 = vsub.f32 %v1790_v0, %v1836_v57  ;;  %v782_v46 = vsub.f32 %v1797_v8, %v1836_v57  ;;  %v783_v50 = vsub.f32 %v1782_v62, %v1836_v57  ;;  %v784_v56 = vsub.f32 %v1794_v3, %v1836_v57 }
 0x23a   : > { %v785_v60 = vsub.f32 %v1803_v13, %v1836_v57  ;;  %v786_v54 = vsub.f32 %v1809_v17, %v1836_v57  ;;  %v787_v58 = vsub.f32 %v1800_v11, %v1836_v57  ;;  %v788_v0 = vsub.f32 %v1806_v15, %v1836_v57 }
 0x23b   : > { %v789_v8 = vsub.f32 %v1815_v21, %v1836_v57  ;;  %v790_v62 = vsub.f32 %v1821_v25, %v1836_v57  ;;  %v791_v3 = vsub.f32 %v1812_v19, %v1836_v57  ;;  %v792_v12 = vsub.f32 %v1818_v23, %v1836_v57 }
 0x23c   : > { %v793_v13 = vsub.f32 %v1827_v29, %v1836_v57  ;;  %v794_v14 = vsub.f32 %v1833_v33, %v1836_v57  ;;  %v795_v16 = vsub.f32 %v1824_v27, %v1836_v57  ;;  %v796_v18 = vsub.f32 %v1830_v31, %v1836_v57 }
 0x23d   : > { %v797_v20 = vmul.f32 1.442695, %v765_v59  ;;  %v799_v22 = vmul.f32 1.442695, %v766_v61  ;;  %v801_v24 = vmul.f32 1.442695, %v767_v63 }
 0x23e   : > { %v803_v26 = vmul.f32 1.442695, %v768_v1  ;;  %v805_v28 = vmul.f32 1.442695, %v769_v2  ;;  %v807_v30 = vmul.f32 1.442695, %v770_v4 }
 0x23f   : > { %1381 = vpow2.f32 %v797_v20  ;;  %v809_v32 = vmul.f32 1.442695, %v771_v10  ;;  %v811_v39 = vmul.f32 1.442695, %v772_v35  ;;  %v813_v41 = vmul.f32 1.442695, %v773_v37 }
 0x240   : > { %1383 = vpow2.f32 %v799_v22  ;;  %v815_v43 = vmul.f32 1.442695, %v774_v34  ;;  %v817_v45 = vmul.f32 1.442695, %v775_v36  ;;  %v819_v47 = vmul.f32 1.442695, %v776_v40 }
 0x241   : > { %1385 = vpow2.f32 %v801_v24  ;;  %v821_v49 = vmul.f32 1.442695, %v777_v44  ;;  %v823_v51 = vmul.f32 1.442695, %v778_v38  ;;  %v825_v55 = vmul.f32 1.442695, %v779_v42 }
 0x242   : > { %1387 = vpow2.f32 %v803_v26  ;;  %v827_v61 = vmul.f32 1.442695, %v780_v48  ;;  %v829_v1 = vmul.f32 1.442695, %v781_v52  ;;  %v831_v35 = vmul.f32 1.442695, %v782_v46 }
 0x243   : > { %1389 = vpow2.f32 %v805_v28  ;;  %v833_v34 = vmul.f32 1.442695, %v783_v50  ;;  %v835_v38 = vmul.f32 1.442695, %v784_v56  ;;  %v837_v48 = vmul.f32 1.442695, %v785_v60 }
 0x244   : > { %1391 = vpow2.f32 %v807_v30  ;;  %v839_v50 = vmul.f32 1.442695, %v786_v54  ;;  %v841_v56 = vmul.f32 1.442695, %v787_v58  ;;  %v843_v17 = vmul.f32 1.442695, %v788_v0 }
 0x245   : > { %1393 = vpow2.f32 %v809_v32  ;;  %v845_v11 = vmul.f32 1.442695, %v789_v8  ;;  %v847_v15 = vmul.f32 1.442695, %v790_v62  ;;  %v849_v21 = vmul.f32 1.442695, %v791_v3 }
 0x246   : > { %1395 = vpow2.f32 %v811_v39  ;;  %v851_v25 = vmul.f32 1.442695, %v792_v12  ;;  %v853_v19 = vmul.f32 1.442695, %v793_v13  ;;  %v855_v23 = vmul.f32 1.442695, %v794_v14 }
 0x247   : > { %1397 = vpow2.f32 %v813_v41 }
 0x248   : > { %1399 = vpow2.f32 %v815_v43 }
 0x249   : > { %v1902_v53 = vpop.eup %1381  ;;  %1401 = vpow2.f32 %v817_v45  ;;  %v857_v45 = vmul.f32 1.442695, %v795_v16 }
 0x24a   : > { %v1904_v59 = vpop.eup %1383  ;;  %1403 = vpow2.f32 %v819_v47 }
 0x24b   : > { %v1906_v63 = vpop.eup %1385  ;;  %1405 = vpow2.f32 %v821_v49  ;;  %v861_v2 = vadd.f32 %v1904_v59, %v1902_v53  ;;  %v902_v4 = vpack.c.bf16 %v1904_v59, %v1902_v53  ;;  %v859_v49 = vmul.f32 1.442695, %v796_v18 }
 0x24c   : > { %v1912_v10 = vpop.eup %1387  ;;  %1407 = vpow2.f32 %v823_v51 }
 0x24d   : > { %v1914_v37 = vpop.eup %1389  ;;  %1409 = vpow2.f32 %v825_v55  ;;  %v862_v36 = vadd.f32 %v1906_v63, %v861_v2  ;;  %v903_v40 = vpack.c.bf16 %v1912_v10, %v1906_v63 }
 0x24e   : > { %v1919_v44 = vpop.eup %1391  ;;  %1411 = vpow2.f32 %v827_v61 }
 0x24f   : > { %v1921_v42 = vpop.eup %1393  ;;  %1413 = vpow2.f32 %v829_v1  ;;  %v863_v52 = vadd.f32 %v1912_v10, %v862_v36  ;;  %v904_v46 = vpack.c.bf16 %v1919_v44, %v1914_v37 }
 0x250   : > { %v1926_v20 = vpop.eup %1395  ;;  %1415 = vpow2.f32 %v831_v35 }
 0x251   : > { %v1931_v22 = vpop.eup %1397  ;;  %1417 = vpow2.f32 %v833_v34  ;;  %v864_v60 = vadd.f32 %v1914_v37, %v863_v52  ;;  %v905_v24 = vpack.c.bf16 %v1926_v20, %v1921_v42 }
 0x252   : > { %v1939_v26 = vpop.eup %1399  ;;  %1419 = vpow2.f32 %v835_v38 }
 0x253   : > { %v1944_v54 = vpop.eup %1401  ;;  %1421 = vpow2.f32 %v837_v48  ;;  %v865_v58 = vadd.f32 %v1919_v44, %v864_v60  ;;  %v906_v28 = vpack.c.bf16 %v1939_v26, %v1931_v22 }
 0x254   : > { %v1952_v30 = vpop.eup %1403  ;;  %1423 = vpow2.f32 %v839_v50 }
 0x255   : > { %v1957_v0 = vpop.eup %1405  ;;  %1425 = vpow2.f32 %v841_v56  ;;  %v866_v8 = vadd.f32 %v1921_v42, %v865_v58  ;;  %v907_v32 = vpack.c.bf16 %v1952_v30, %v1944_v54 }
 0x256   : > { %v1965_v39 = vpop.eup %1407  ;;  %1427 = vpow2.f32 %v843_v17 }
 0x257   : > { %v1970_v62 = vpop.eup %1409  ;;  %1429 = vpow2.f32 %v845_v11  ;;  %v867_v3 = vadd.f32 %v1926_v20, %v866_v8  ;;  %v908_v41 = vpack.c.bf16 %v1965_v39, %v1957_v0 }
 0x258   : > { %v1978_v43 = vpop.eup %1411  ;;  %1431 = vpow2.f32 %v847_v15 }
 0x259   : > { %v1414_v12 = vpop.eup %1413  ;;  %1433 = vpow2.f32 %v849_v21  ;;  %v868_v29 = vadd.f32 %v1931_v22, %v867_v3  ;;  %v909_v13 = vpack.c.bf16 %v1978_v43, %v1970_v62  ;;  %v1375_v22 = vld [vmem:[%s1787_s14] ss:$8 sps:$4 sm:$0xff]  }
 0x25a   : > { %v1416_v47 = vpop.eup %1415  ;;  %1435 = vpow2.f32 %v851_v25 }
 0x25b   : > { %v1418_v51 = vpop.eup %1417  ;;  %1437 = vpow2.f32 %v853_v19  ;;  %v869_v33 = vadd.f32 %v1939_v26, %v868_v29  ;;  %v910_v14 = vpack.c.bf16 %v1416_v47, %v1414_v12  ;;  %v1378_v26 = vld [vmem:[%s1787_s14 + $0x14] ss:$8 sps:$4 sm:$0xff]  }
 0x25c   : > { %v1420_v55 = vpop.eup %1419  ;;  %1439 = vpow2.f32 %v855_v23 }
 0x25d   : > { %v1422_v27 = vpop.eup %1421  ;;  %1441 = vpow2.f32 %v857_v45  ;;  %v870_v16 = vadd.f32 %v1944_v54, %v869_v33  ;;  %1211 = vmatprep.subr.bf16.mxu0 %v910_v14  ;;  %v911_v61 = vpack.c.bf16 %v1420_v55, %v1418_v51 }
 0x25e   : > { %v1424_v1 = vpop.eup %1423  ;;  %1443 = vpow2.f32 %v859_v49  ;;  %1212 = vmatpush3.bf16.msra.mxu0 %v902_v4  ;;  %v993_v49 = vstv %s988_s15 }
 0x25f   : > { %v1426_v31 = vpop.eup %1425  ;;  %v871_v57 = vadd.f32 %v1952_v30, %v870_v16  ;;  %1213 = vmatprep.subr.bf16.mxu0 %v911_v61  ;;  %v912_v18 = vpack.c.bf16 %v1424_v1, %v1422_v27 }
 0x260   : > { %v1428_v2 = vpop.eup %1427 }
 0x261   : > { %v1430_v35 = vpop.eup %1429  ;;  %v872_v34 = vadd.f32 %v1957_v0, %v871_v57  ;;  %v913_v36 = vpack.c.bf16 %v1428_v2, %v1426_v31 }
 0x262   : > { %v1432_v38 = vpop.eup %1431  ;;  %1214 = vmatpush3.bf16.msra.mxu0 %v903_v40 }
 0x263   : > { %v1434_v48 = vpop.eup %1433  ;;  %v873_v52 = vadd.f32 %v1965_v39, %v872_v34  ;;  %1215 = vmatprep.subr.bf16.mxu0 %v912_v18  ;;  %v914_v53 = vpack.c.bf16 %v1432_v38, %v1430_v35 }
 0x264   : > { %v1436_v59 = vpop.eup %1435 }
 0x265   : > { %v1438_v4 = vpop.eup %1437  ;;  %v874_v50 = vadd.f32 %v1970_v62, %v873_v52  ;;  %v915_v56 = vpack.c.bf16 %v1436_v59, %v1434_v48 }
 0x266   : > { %v1440_v60 = vpop.eup %1439  ;;  %1216 = vmatpush3.bf16.msra.mxu0 %v904_v46 }
 0x267   : > { %v1442_v17 = vpop.eup %1441  ;;  %v875_v11 = vadd.f32 %v1978_v43, %v874_v50  ;;  %1217 = vmatprep.subr.bf16.mxu0 %v913_v36  ;;  %v916_v63 = vpack.c.bf16 %v1440_v60, %v1438_v4 }
 0x268   : > { %v1444_v10 = vpop.eup %1443 }
 0x269   : > { %v876_v40 = vadd.f32 %v1414_v12, %v875_v11  ;;  %v917_v58 = vpack.c.bf16 %v1444_v10, %v1442_v17 }
 0x26a   : > { %1218 = vmatpush3.bf16.msra.mxu0 %v905_v24 }
 0x26b   : > { %v877_v15 = vadd.f32 %v1416_v47, %v876_v40  ;;  %1219 = vmatprep.subr.bf16.mxu0 %v914_v53 }
 0x26d   : > { %v878_v21 = vadd.f32 %v1418_v51, %v877_v15 }
 0x26e   : > { %1220 = vmatpush3.bf16.msra.mxu0 %v906_v28 }
 0x26f   : > { %v879_v37 = vadd.f32 %v1420_v55, %v878_v21  ;;  %1221 = vmatprep.subr.bf16.mxu0 %v915_v56 }
 0x271   : > { %v880_v44 = vadd.f32 %v1422_v27, %v879_v37 }
 0x272   : > { %1222 = vmatpush3.bf16.msra.mxu0 %v907_v32  ;;  %v1380_v32 = vld [vmem:[%s1787_s14 + $0x10] ss:$8 sps:$4 sm:$0xff]   ;;  %s1453_s14 = scalar_lea.vmem %s1452_s11, 1024 }
 0x273   : > { %v881_v46 = vadd.f32 %v1424_v1, %v880_v44  ;;  %1223 = vmatprep.subr.bf16.mxu0 %v916_v63  ;;  %p1455_p6 = scmp.lt.s32.totalorder %s1453_s14, %s1447_s6 }
 0x275   : > { %v882_v42 = vadd.f32 %v1426_v31, %v881_v46  ;;  %p1456_p7 = por %p1455_p6, %p1454_p5 }
 0x276   : > { %1224 = vmatpush3.bf16.msra.mxu0 %v908_v41 }
 0x277   : > { %v883_v20 = vadd.f32 %v1428_v2, %v882_v42  ;;  %1225 = vmatprep.subr.bf16.mxu0 %v917_v58  ;;  %p1457_p10 = pnand %p1456_p7, %p1450_p4 }
 0x279   : > { %v884_v24 = vadd.f32 %v1430_v35, %v883_v20 }
 0x27a   : > { %1226 = vmatpush3.bf16.msra.mxu0 %v909_v13 }
 0x27b   : > { %v885_v28 = vadd.f32 %v1432_v38, %v884_v24 }
 0x27d   : > { %v886_v8 = vadd.f32 %v1434_v48, %v885_v28  ;;  %971 = vmatmul.mubr.bf16.vlgmr.msra.gmra.mrb[4].mxu0 %v1375_v22 }
 0x27e   : > { %978 = vmatprep.mubr.bf16.mxu0 %v1378_v26 }
 0x27f   : > { %v887_v54 = vadd.f32 %v1436_v59, %v886_v8 }
 0x281   : > { %v888_v30 = vadd.f32 %v1438_v4, %v887_v54 }
 0x283   : > { %v889_v25 = vadd.f32 %v1440_v60, %v888_v30 }
 0x285   : > { %v890_v62 = vadd.f32 %v1442_v17, %v889_v25  ;;  %979 = vmatmul.mubr.bf16.gmra.mrb[8].mxu0 %v1380_v32 }
 0x287   : > { %v891_v19 = vadd.f32 %v1444_v10, %v890_v62 }
 0x289   : > { %v892_v3 = vrot.slane %v891_v19, 4 }
 0x28b   : > { %v893_v0 = vadd.f32 %v892_v3, %v891_v19 }
 0x28d   : > { %v894_v39 = vrot.slane %v893_v0, 2 }
 0x28f   : > { %v895_v41 = vadd.f32 %v894_v39, %v893_v0 }
 0x291   : > { %v896_v43 = vrot.slane %v895_v41, 1 }
 0x293   : > { %v897_v23 = vadd.f32 %v896_v43, %v895_v41 }
 0x295   : > { %1445 = vrcp.f32 %v897_v23 }
 0x29f   : > { %v1446_v47 = vpop.eup %1445 }
 0x350   : > { %v1227_v12 = vpop.f32.mrb[4].mxu0 }
 0x351   : > { %v1228_v45 = vpop.f32.mrb[5].mxu0 }
 0x352   : > { %v1229_v29 = vadd.f32 %v1228_v45, %v1227_v12  ;;  %v1230_v13 = vpop.f32.mrb[6].mxu0 }
 0x353   : > { %v1231_v51 = vpop.f32.mrb[7].mxu0 }
 0x354   : > { %v989_v33 = vmul.f32 %v1446_v47, %v1229_v29  ;;  %v1232_v14 = vadd.f32 %v1231_v51, %v1230_v13 }
 0x356   : > { %v994_v55 = vmul.f32 %v993_v49, %v989_v33  ;;  %v990_v27 = vmul.f32 %v1446_v47, %v1232_v14 }
 0x358   : > { %v998_v16 = vadd.f32 %v994_v55, %v1675_v5  ;;  %v995_v61 = vmul.f32 %v993_v49, %v990_v27  ;;  %v1233_v1 = vpop.f32.mrb[8].mxu0 }
 0x359   : > { %v1234_v31 = vpop.f32.mrb[9].mxu0 }
 0x35a   : > { %1002 = vst [vmem:[%s317_s17] sm:$0xff] %v998_v16  ;;  %v999_v57 = vadd.f32 %v995_v61, %v1677_v6  ;;  %v1235_v18 = vadd.f32 %v1234_v31, %v1233_v1  ;;  %v1236_v2 = vpop.f32.mrb[10].mxu0 }
 0x35b   : > { %v1237_v35 = vpop.f32.mrb[11].mxu0 }
 0x35c   : > { %1003 = vst [vmem:[%s317_s17 + $0x8] sm:$0xff] %v999_v57  ;;  %v991_v34 = vmul.f32 %v1446_v47, %v1235_v18  ;;  %v1238_v36 = vadd.f32 %v1237_v35, %v1236_v2 }
 0x35e   : > { %v996_v38 = vmul.f32 %v993_v49, %v991_v34  ;;  %v992_v5 = vmul.f32 %v1446_v47, %v1238_v36 }
 0x360   : > { %v1000_v6 = vadd.f32 %v996_v38, %v1679_v7  ;;  %v997_v48 = vmul.f32 %v993_v49, %v992_v5 }
 0x362   : > { %1004 = vst [vmem:[%s317_s17 + $0x10] sm:$0xff] %v1000_v6  ;;  %v1001_v52 = vadd.f32 %v997_v48, %v1683_v9 }
 0x364   : > { %1005 = vst [vmem:[%s317_s17 + $0x18] sm:$0xff] %v1001_v52 }
 0x365   : > { %1460 = shalt.err (!%p1457_p10)
}
 0x366   : > { %s1461_s7 = scalar_lea.hbm %s2035_s28, 512  ;;  %s1465_s17 = scalar_lea.hbm %s2096_s5, 2048 }
 0x367   : > { %p1462_p11 = scmp.ne.s32.totalorder %s2035_s28, %s1461_s7  ;;  %p1466_p0 = scmp.lt.u32.totalorder %s2035_s28, %s2096_s5 }
 0x368   : > { %p1467_p1 = scmp.lt.u32.totalorder %s1465_s17, %s1461_s7  ;;  %p1469_p3 = scmp.lt.u32.totalorder %s1461_s7, %s2035_s28 }
 0x369   : > { %p1463_p12 = pnand %p1462_p11, %p1640_p8 }
 0x36a   : > { %p1468_p2 = por %p1467_p1, %p1466_p0 }
 0x36b   : > { %p1464_p13 = pneg %p1463_p12 }
 0x36c   : > { %p1470_p4 = por %p1469_p3, %p1468_p2 }
 0x36e   : > { %p1471_p5 = pnand %p1470_p4, %p1464_p13 }
 0x370   : > { %1474 = shalt.err (!%p1471_p5)
}
 0x371   : > { %s1544_s24 = smov 128   ;;  %s1545_s12 = smov 256  }
 0x372   : > { %s1546_s6 = smov 8  }
 0x373   : > { %1283 = dma.vmem_to_hbm [thread:$0]  (%p1640_p8), %s2028_s19, 512, %s2035_s28, %s2039_s23, %s1544_s24, %s1545_s12, %s1546_s6  }
 0x374 PF: > { %p1289_p6 = scmp.ge.s32.totalorder %s1541_s27, 2  ;;  %s1036_s10 = sand.u32 1, %s1513_s20  }
 0x375   : > { %s1037_s11 = scalar_lea.sflag [#allocation5], %s1036_s10 }
 0x376   : > { %p1286_p7 = pnand %p1289_p6, %p1644_p9 }
 0x378   : > { %1508 = dma.done.wait (!%p1286_p7), %s1037_s11, 512  }
 0x379   : > { %1510 = vsyncadd (!%p1286_p7), %s1037_s11, 4294966784  ;;  %s19_s27 = sadd.s32 1, %s1541_s27   ;;  %s2100_s20 = smov %s1517_s21 }
 0x37a   : > { %p16_p10 = scmp.ge.s32.totalorder %s19_s27, 6   ;;  %s2101_s21 = smov %s1521_s22 }
 0x37b   : > { %s2102_s22 = smov %s1652_s13  ;;  %s2103_s23 = smov %s1533_s25 }
 0x37c   : > { %s2104_s24 = smov %s1537_s26  ;;  %s2105_s25 = smov %s2108_s29 }
 0x37d   : > { %s2106_s26 = smov %s2112_s30  ;;  %18 = sbr.rel (!%p16_p10) target bundleno = 7 (0x7), region = 124 }
 0x384   :  { %1042 = vsyncpa [#allocation5], 1 }
 0x385   :  { %1044 = vsyncpa [#allocation5 + $0x1], 1 }

</bundles_post_ra>
